<compile_context>
chip_gen: v7x
topology: tpu7x:2x2x1
jax: 0.10.0
libtpu: 0.0.40
codegen_flags: <defaults>
</compile_context>

<pallas_src>
import functools

import jax
import jax.numpy as jnp
from jax import lax
from jax.experimental import pallas as pl
from jax.experimental.pallas import tpu as pltpu


def _stsr_kernel(x_ref, wstack_ref, bstack_ref, cw1_ref, cw2_ref, srow_ref,
                 inst_ref, tt_ref, fc_ref, bag_ref, *, n_attn, n_clz, n_red):
    """One grid step processes a group of G batch items; T stays on lanes."""
    f32 = jnp.float32
    G, C, T = x_ref.shape
    A, N, H = n_attn, n_clz, n_red

    # Packed weights (constant across the grid, all tiny).
    wstack = wstack_ref[...]                       # [A+N, C]  rows <A: tw1^T, rows >=A: clw^T
    bstack = bstack_ref[...]                       # [A+N, 1]  tb1 ; clb
    cw1 = cw1_ref[...]                             # [C, H]
    cw2 = cw2_ref[...]                             # [H, C]
    srow = srow_ref[...]                           # [1, A+1+H+C]  tw2 | tb2 | cb1 | cb2

    tw2 = srow[:, :A]                              # [1, A]
    tb2 = srow[:, A:A + 1]                         # [1, 1]
    cb1 = srow[:, A + 1:A + 1 + H]                 # [1, H]
    cb2 = srow[:, A + 1 + H:A + 1 + H + C]         # [1, C]
    tb1 = bstack[:A, :]                            # [A, 1]
    clb = bstack[A:, :]                            # [N, 1]

    inv_t = f32(1.0 / T)

    # ---- Pass 1: saliency reductions, collected as lane-dense rows. --------
    frel_rows, trel_rows = [], []
    for g in range(G):                             # static unroll; G is small
        xg = x_ref[g].astype(f32)                  # [C, T]
        frel_rows.append(jnp.mean(xg, axis=1)[None, :])   # feature relevance [1, C]
        trel_rows.append(jnp.mean(xg, axis=0)[None, :])   # time relevance    [1, T]
    frel = frel_rows[0] if G == 1 else jnp.concatenate(frel_rows, axis=0)  # [G, C]
    trel = trel_rows[0] if G == 1 else jnp.concatenate(trel_rows, axis=0)  # [G, T]

    # ---- Channel-attention MLP, batched over the whole group. --------------
    ch = jax.nn.relu(jnp.dot(frel, cw1, preferred_element_type=f32) + cb1)   # [G, H]
    ca = jax.nn.sigmoid(jnp.dot(ch, cw2, preferred_element_type=f32) + cb2)  # [G, C]
    col = frel * ca                                                          # [G, C]

    # Rows < A keep the raw time-attention weight; rows >= A (classifier) get
    # their columns scaled per item by col = feat_rel * channel_attention.
    is_attn_row = lax.broadcasted_iota(jnp.int32, (A + N, C), 0) < A

    # ---- Pass 2: one stacked MXU matmul per item + attention + logits. -----
    for g in range(G):
        xg = x_ref[g].astype(f32)                                   # [C, T]
        colg = col[g:g + 1, :]                                      # [1, C]
        lhs = wstack * jnp.where(is_attn_row, f32(1.0), colg)       # [A+N, C]
        big = jnp.dot(lhs, xg, preferred_element_type=f32)          # [A+N, T]

        # Time attention head: Linear -> Tanh -> Linear -> Sigmoid.
        h = jnp.tanh(big[:A, :] + tb1)                              # [A, T]
        ta = jax.nn.sigmoid(
            jnp.dot(tw2, h, preferred_element_type=f32) + tb2)      # [1, T]

        roww = trel[g:g + 1, :] * ta                                # [1, T]
        inst = roww * big[A:, :] + clb                              # [N, T]

        # Bag logits: mean over T of (inst * ta) on VPU/XLU (lane reduce).
        bag = (jnp.sum(inst * ta, axis=1) * inv_t)[None, :]         # [1, N]

        inst_ref[g] = inst.astype(inst_ref.dtype)
        tt_ref[g] = jnp.concatenate([ta, trel[g:g + 1, :]],
                                    axis=0).astype(tt_ref.dtype)    # [2, T]
        fc_ref[g] = jnp.concatenate([frel[g:g + 1, :], ca[g:g + 1, :]],
                                    axis=0).astype(fc_ref.dtype)    # [2, C]
        bag_ref[g] = bag.astype(bag_ref.dtype)                      # [1, N]


def _tpu_vmem_limit_bytes():
    """Generation-aware scoped-VMEM request (v7x has only 64 MiB physical)."""
    fallback = 48 * 1024 * 1024
    try:
        info = pltpu.get_tpu_info()
        cap = int(getattr(info, "vmem_capacity_bytes", 0) or 0)
    except Exception:
        cap = 0
    if cap <= 0:
        return fallback
    # Leave ~25% headroom for compiler-internal scratch; never ask for >100MiB.
    return max(32 * 1024 * 1024, min((cap * 3) // 4, 100 * 1024 * 1024))


def _pick_group_size(batch, item_bytes, vmem_limit_bytes,
                     min_steps=4, target_block_bytes=2 * 1024 * 1024):
    """Group size from the VMEM budget; keep >=4 grid steps when possible.

    min_steps=4 gives each of the two v7x TensorCores at least 2 grid steps
    so the double-buffered pipeline is never fully exposed.
    """
    budget = max(vmem_limit_bytes // 2, item_bytes)      # headroom for weights/scratch
    max_g = max(1, budget // (2 * item_bytes))           # 2x = double buffering
    divisors = [g for g in range(1, batch + 1) if batch % g == 0 and g <= max_g]
    if not divisors:
        divisors = [1]
    for steps_req in (min_steps, 2, 1):
        cands = [g for g in divisors if batch // g >= steps_req]
        if not cands:
            continue
        big_enough = [g for g in cands if g * item_bytes >= target_block_bytes]
        # Smallest group already reaching the bandwidth-friendly block size
        # (more steps => better pipelining / core balance); otherwise the
        # largest group that still satisfies the step requirement.
        return min(big_enough) if big_enough else max(cands)
    return 1


def init_params(key, d_in, n_clz, d_attn=8, reduction_ratio=4):
    """Deterministic synthetic parameters. Weights use the [in, out] convention."""
    d_red = d_in // reduction_ratio
    ks = jax.random.split(key, 6)
    scale = 0.1
    return {
        "tw1": scale * jax.random.normal(ks[0], (d_in, d_attn), jnp.float32),
        "tb1": jnp.zeros((1, d_attn), jnp.float32),
        "tw2": scale * jax.random.normal(ks[1], (1, d_attn), jnp.float32),
        "tb2": jnp.zeros((1, 1), jnp.float32),
        "cw1": scale * jax.random.normal(ks[2], (d_in, d_red), jnp.float32),
        "cb1": jnp.zeros((1, d_red), jnp.float32),
        "cw2": scale * jax.random.normal(ks[3], (d_red, d_in), jnp.float32),
        "cb2": jnp.zeros((1, d_in), jnp.float32),
        "clw": scale * jax.random.normal(ks[4], (d_in, n_clz), jnp.float32),
        "clb": scale * jax.random.normal(ks[5], (1, n_clz), jnp.float32),
    }


@functools.partial(jax.jit, static_argnames=("n_clz", "group_size"))
def stsr_pooling(x, params, *, n_clz, group_size=None):
    B, C, T = x.shape
    A = params["tw1"].shape[1]
    H = params["cw1"].shape[1]

    vmem_limit = _tpu_vmem_limit_bytes()
    # Per-item VMEM footprint of the pipelined blocks (input + outputs), f32.
    item_bytes = 4 * (C * T + n_clz * T + 2 * T + 2 * C + n_clz)
    G = (_pick_group_size(B, item_bytes, vmem_limit)
         if group_size is None else group_size)
    assert B % G == 0, (B, G)

    # Weight packing (tiny, done once per call outside the kernel):
    #   wstack : [A+n_clz, C] = [tw1^T ; clw^T]          (stacked matmul LHS)
    #   bstack : [A+n_clz, 1] = [tb1 ; clb]              (column biases)
    #   srow   : [1, A+1+H+C] = [tw2 | tb2 | cb1 | cb2]  (row weights/biases)
    wstack = jnp.concatenate([params["tw1"].T, params["clw"].T], axis=0)
    bstack = jnp.concatenate([params["tb1"].reshape(A, 1),
                              params["clb"].reshape(n_clz, 1)], axis=0)
    srow = jnp.concatenate([params["tw2"].reshape(1, A),
                            params["tb2"].reshape(1, 1),
                            params["cb1"].reshape(1, H),
                            params["cb2"].reshape(1, C)], axis=1)
    cw1 = params["cw1"]                      # [C, H]
    cw2 = params["cw2"]                      # [H, C]

    kernel = functools.partial(_stsr_kernel, n_attn=A, n_clz=n_clz, n_red=H)

    out_shapes = (
        jax.ShapeDtypeStruct((B, n_clz, T), jnp.float32),   # instance logits
        jax.ShapeDtypeStruct((B, 2, T), jnp.float32),       # [time_attn ; time_rel]
        jax.ShapeDtypeStruct((B, 2, C), jnp.float32),       # [feat_rel ; chan_attn]
        jax.ShapeDtypeStruct((B, 1, n_clz), jnp.float32),   # bag logits
    )

    def const_spec(w):
        return pl.BlockSpec(w.shape, lambda b: (0,) * w.ndim)

    grid_spec = pltpu.PrefetchScalarGridSpec(
        num_scalar_prefetch=0,
        grid=(B // G,),
        in_specs=[pl.BlockSpec((G, C, T), lambda b: (b, 0, 0)),
                  const_spec(wstack), const_spec(bstack),
                  const_spec(cw1), const_spec(cw2), const_spec(srow)],
        out_specs=[
            pl.BlockSpec((G, n_clz, T), lambda b: (b, 0, 0)),
            pl.BlockSpec((G, 2, T), lambda b: (b, 0, 0)),
            pl.BlockSpec((G, 2, C), lambda b: (b, 0, 0)),
            pl.BlockSpec((G, 1, n_clz), lambda b: (b, 0, 0)),
        ],
    )

    inst, tt, fc, bag = pl.pallas_call(
        kernel,
        out_shape=out_shapes,
        grid_spec=grid_spec,
        compiler_params=pltpu.CompilerParams(
            dimension_semantics=("parallel",),
            vmem_limit_bytes=vmem_limit),
    )(x, wstack, bstack, cw1, cw2, srow)

    # Cheap rank-1 reconstructions outside the kernel (keeps kernel HBM writes
    # small and lane-dense).
    feat_rel = fc[:, 0, :]                               # [B, C]
    chan_attn = fc[:, 1, :]                              # [B, C]
    time_rel = tt[:, 1, :]                               # [B, T]
    tsr = feat_rel[:, :, None] * time_rel[:, None, :]    # [B, C, T]
    return {
        "bag_logits": bag[:, 0, :],                      # [B, n_clz]
        "instance_logits": inst,                         # [B, n_clz, T]
        "time_attention": tt[:, 0, :],                   # [B, T]
        "channel_attention": jnp.broadcast_to(chan_attn[:, :, None], (B, C, T)),
        "tsr_weight": tsr,                               # [B, C, T]
    }


def stsr_pooling_ref(x, params):
    """Pure-JAX reference matching the PyTorch forward."""
    time_rel = jnp.mean(x, axis=1, keepdims=True)            # [B,1,T]
    feat_rel = jnp.mean(x, axis=2, keepdims=True)            # [B,C,1]
    tsr = time_rel * feat_rel                                 # [B,C,T]
    xt = jnp.transpose(x, (0, 2, 1))                          # [B,T,C]
    h = jnp.tanh(xt @ params["tw1"] + params["tb1"])          # [B,T,A]
    ta = jax.nn.sigmoid(jnp.sum(h * params["tw2"], -1, keepdims=True)
                        + params["tb2"])                      # [B,T,1]
    ta_row = jnp.transpose(ta, (0, 2, 1))                     # [B,1,T]
    cm = jnp.mean(x, axis=2)                                  # [B,C]
    ch = jax.nn.relu(cm @ params["cw1"] + params["cb1"])
    ca = jax.nn.sigmoid(ch @ params["cw2"] + params["cb2"])   # [B,C]
    ca_exp = jnp.broadcast_to(ca[:, :, None], tsr.shape)
    final_w = tsr * ta_row * ca_exp
    wx = x * final_w
    il = jnp.transpose(wx, (0, 2, 1)) @ params["clw"] + params["clb"]  # [B,T,n_clz]
    bag = jnp.mean(il * ta, axis=1)
    return {
        "bag_logits": bag,
        "instance_logits": jnp.transpose(il, (0, 2, 1)),
        "time_attention": ta[:, :, 0],
        "channel_attention": ca_exp,
        "tsr_weight": tsr,
    }


if __name__ == "__main__":
    B, d_in, T = 2, 16, 32
    n_clz, d_attn, reduction = 4, 8, 4

    key = jax.random.PRNGKey(0)
    kx, kp = jax.random.split(key)
    x = jax.random.normal(kx, (B, d_in, T), jnp.float32)
    params = init_params(kp, d_in, n_clz, d_attn, reduction)

    out = stsr_pooling(x, params, n_clz=n_clz)
    out = jax.tree_util.tree_map(jax.block_until_ready, out)

    ref = stsr_pooling_ref(x, params)
    for k in ref:
        assert out[k].shape == ref[k].shape, (k, out[k].shape, ref[k].shape)
        assert jnp.allclose(out[k], ref[k], atol=1e-5, rtol=1e-5), k

    print("KERNEL_OK")
</pallas_src>

<mosaic_0001>
module attributes {stable_mosaic.version = 11 : i64} {
  func.func @_stsr_kernel(%arg0: i32, %arg1: memref<1x16x32xf32, #tpu.memory_space<vmem>>, %arg2: memref<12x16xf32, #tpu.memory_space<vmem>>, %arg3: memref<12x1xf32, #tpu.memory_space<vmem>>, %arg4: memref<16x4xf32, #tpu.memory_space<vmem>>, %arg5: memref<4x16xf32, #tpu.memory_space<vmem>>, %arg6: memref<1x29xf32, #tpu.memory_space<vmem>>, %arg7: memref<1x4x32xf32, #tpu.memory_space<vmem>>, %arg8: memref<1x2x32xf32, #tpu.memory_space<vmem>>, %arg9: memref<1x2x16xf32, #tpu.memory_space<vmem>>, %arg10: memref<1x1x4xf32, #tpu.memory_space<vmem>>) attributes {dimension_semantics = [#tpu.dimension_semantics<parallel>], iteration_bounds = array<i64: 2>, scalar_prefetch = 0 : i64, scratch_operands = 0 : i64, tpu.core_type = #tpu.core_type<tc>, window_params = [{transform_indices = @transform_0, window_bounds = array<i64: 1, 16, 32>}, {pipeline_mode = #tpu.pipeline_mode<synchronous>, transform_indices = @transform_1, window_bounds = array<i64: 12, 16>}, {pipeline_mode = #tpu.pipeline_mode<synchronous>, transform_indices = @transform_2, window_bounds = array<i64: 12, 1>}, {pipeline_mode = #tpu.pipeline_mode<synchronous>, transform_indices = @transform_3, window_bounds = array<i64: 16, 4>}, {pipeline_mode = #tpu.pipeline_mode<synchronous>, transform_indices = @transform_4, window_bounds = array<i64: 4, 16>}, {pipeline_mode = #tpu.pipeline_mode<synchronous>, transform_indices = @transform_5, window_bounds = array<i64: 1, 29>}, {transform_indices = @transform_6, window_bounds = array<i64: 1, 4, 32>}, {transform_indices = @transform_7, window_bounds = array<i64: 1, 2, 32>}, {transform_indices = @transform_8, window_bounds = array<i64: 1, 2, 16>}, {transform_indices = @transform_9, window_bounds = array<i64: 1, 1, 4>}]} {
    %c0 = arith.constant 0 : index
    %c0_0 = arith.constant 0 : index
    %0 = vector.load %arg2[%c0, %c0_0] : memref<12x16xf32, #tpu.memory_space<vmem>>, vector<12x16xf32>
    %c0_1 = arith.constant 0 : index
    %c0_2 = arith.constant 0 : index
    %1 = vector.load %arg3[%c0_1, %c0_2] : memref<12x1xf32, #tpu.memory_space<vmem>>, vector<12x1xf32>
    %c0_3 = arith.constant 0 : index
    %c0_4 = arith.constant 0 : index
    %2 = vector.load %arg4[%c0_3, %c0_4] : memref<16x4xf32, #tpu.memory_space<vmem>>, vector<16x4xf32>
    %c0_5 = arith.constant 0 : index
    %c0_6 = arith.constant 0 : index
    %3 = vector.load %arg5[%c0_5, %c0_6] : memref<4x16xf32, #tpu.memory_space<vmem>>, vector<4x16xf32>
    %c0_7 = arith.constant 0 : index
    %c0_8 = arith.constant 0 : index
    %4 = vector.load %arg6[%c0_7, %c0_8] : memref<1x29xf32, #tpu.memory_space<vmem>>, vector<1x29xf32>
    %5 = vector.extract_strided_slice %4 {offsets = [0, 0], sizes = [1, 8], strides = [1, 1]} : vector<1x29xf32> to vector<1x8xf32>
    %6 = vector.extract_strided_slice %4 {offsets = [0, 8], sizes = [1, 1], strides = [1, 1]} : vector<1x29xf32> to vector<1x1xf32>
    %7 = vector.extract_strided_slice %4 {offsets = [0, 9], sizes = [1, 4], strides = [1, 1]} : vector<1x29xf32> to vector<1x4xf32>
    %8 = vector.extract_strided_slice %4 {offsets = [0, 13], sizes = [1, 16], strides = [1, 1]} : vector<1x29xf32> to vector<1x16xf32>
    %9 = vector.extract_strided_slice %1 {offsets = [0, 0], sizes = [8, 1], strides = [1, 1]} : vector<12x1xf32> to vector<8x1xf32>
    %10 = vector.extract_strided_slice %1 {offsets = [8, 0], sizes = [4, 1], strides = [1, 1]} : vector<12x1xf32> to vector<4x1xf32>
    %c0_9 = arith.constant 0 : index
    %c0_10 = arith.constant 0 : index
    %c0_11 = arith.constant 0 : index
    %11 = vector.load %arg1[%c0_9, %c0_10, %c0_11] : memref<1x16x32xf32, #tpu.memory_space<vmem>>, vector<1x16x32xf32>
    %12 = vector.shape_cast %11 : vector<1x16x32xf32> to vector<16x32xf32>
    %cst = arith.constant dense<0.000000e+00> : vector<16xf32>
    %13 = vector.multi_reduction <add>, %12, %cst [1] : vector<16x32xf32> to vector<16xf32>
    %cst_12 = arith.constant 3.200000e+01 : f32
    %14 = vector.broadcast %cst_12 : f32 to vector<16xf32>
    %15 = arith.divf %13, %14 : vector<16xf32>
    %16 = vector.shape_cast %15 : vector<16xf32> to vector<1x16xf32>
    %cst_13 = arith.constant dense<0.000000e+00> : vector<32xf32>
    %17 = vector.multi_reduction <add>, %12, %cst_13 [0] : vector<16x32xf32> to vector<32xf32>
    %cst_14 = arith.constant 1.600000e+01 : f32
    %18 = vector.broadcast %cst_14 : f32 to vector<32xf32>
    %19 = arith.divf %17, %18 : vector<32xf32>
    %20 = vector.shape_cast %19 : vector<32xf32> to vector<1x32xf32>
    %cst_15 = arith.constant dense<0.000000e+00> : vector<1x4xf32>
    %21 = tpu.matmul %16, %2, %cst_15 {dimension_numbers = #tpu.dot_dimension_numbers<[1], [0], [0], [1], [0, 0, 1, 1], [], []>} : vector<1x16xf32>, vector<16x4xf32>, vector<1x4xf32> -> vector<1x4xf32>
    %22 = arith.addf %21, %7 : vector<1x4xf32>
    %cst_16 = arith.constant 0.000000e+00 : f32
    %23 = vector.broadcast %cst_16 : f32 to vector<1x4xf32>
    %24 = arith.maximumf %22, %23 : vector<1x4xf32>
    %cst_17 = arith.constant dense<0.000000e+00> : vector<1x16xf32>
    %25 = tpu.matmul %24, %3, %cst_17 {dimension_numbers = #tpu.dot_dimension_numbers<[1], [0], [0], [1], [0, 0, 1, 1], [], []>} : vector<1x4xf32>, vector<4x16xf32>, vector<1x16xf32> -> vector<1x16xf32>
    %26 = arith.addf %25, %8 : vector<1x16xf32>
    %27 = arith.negf %26 : vector<1x16xf32>
    %28 = math.exp %27 : vector<1x16xf32>
    %cst_18 = arith.constant 1.000000e+00 : f32
    %29 = vector.broadcast %cst_18 : f32 to vector<1x16xf32>
    %30 = arith.addf %29, %28 : vector<1x16xf32>
    %31 = arith.divf %29, %30 : vector<1x16xf32>
    %32 = arith.mulf %16, %31 : vector<1x16xf32>
    %33 = tpu.iota {dimensions = array<i32: 0>} : vector<12x16xi32>
    %c8_i32 = arith.constant 8 : i32
    %34 = vector.broadcast %c8_i32 : i32 to vector<12x16xi32>
    %35 = arith.cmpi slt, %33, %34 : vector<12x16xi32>
    %c0_19 = arith.constant 0 : index
    %c0_20 = arith.constant 0 : index
    %c0_21 = arith.constant 0 : index
    %36 = vector.load %arg1[%c0_19, %c0_20, %c0_21] : memref<1x16x32xf32, #tpu.memory_space<vmem>>, vector<1x16x32xf32>
    %37 = vector.shape_cast %36 : vector<1x16x32xf32> to vector<16x32xf32>
    %cst_22 = arith.constant 1.000000e+00 : f32
    %38 = vector.broadcast %cst_22 : f32 to vector<12x16xf32>
    %39 = vector.shape_cast %32 : vector<1x16xf32> to vector<1x16xf32>
    %40 = vector.broadcast %39 : vector<1x16xf32> to vector<12x16xf32>
    %41 = arith.select %35, %38, %40 : vector<12x16xi1>, vector<12x16xf32>
    %42 = arith.mulf %0, %41 : vector<12x16xf32>
    %cst_23 = arith.constant dense<0.000000e+00> : vector<12x32xf32>
    %43 = tpu.matmul %42, %37, %cst_23 {dimension_numbers = #tpu.dot_dimension_numbers<[1], [0], [0], [1], [0, 0, 1, 1], [], []>} : vector<12x16xf32>, vector<16x32xf32>, vector<12x32xf32> -> vector<12x32xf32>
    %44 = vector.extract_strided_slice %43 {offsets = [0, 0], sizes = [8, 32], strides = [1, 1]} : vector<12x32xf32> to vector<8x32xf32>
    %45 = vector.broadcast %9 : vector<8x1xf32> to vector<8x32xf32>
    %46 = arith.addf %44, %45 : vector<8x32xf32>
    %47 = math.tanh %46 : vector<8x32xf32>
    %cst_24 = arith.constant dense<0.000000e+00> : vector<1x32xf32>
    %48 = tpu.matmul %5, %47, %cst_24 {dimension_numbers = #tpu.dot_dimension_numbers<[1], [0], [0], [1], [0, 0, 1, 1], [], []>} : vector<1x8xf32>, vector<8x32xf32>, vector<1x32xf32> -> vector<1x32xf32>
    %49 = vector.broadcast %6 : vector<1x1xf32> to vector<1x32xf32>
    %50 = arith.addf %48, %49 : vector<1x32xf32>
    %51 = arith.negf %50 : vector<1x32xf32>
    %52 = math.exp %51 : vector<1x32xf32>
    %cst_25 = arith.constant 1.000000e+00 : f32
    %53 = vector.broadcast %cst_25 : f32 to vector<1x32xf32>
    %54 = arith.addf %53, %52 : vector<1x32xf32>
    %55 = arith.divf %53, %54 : vector<1x32xf32>
    %56 = arith.mulf %20, %55 : vector<1x32xf32>
    %57 = vector.extract_strided_slice %43 {offsets = [8, 0], sizes = [4, 32], strides = [1, 1]} : vector<12x32xf32> to vector<4x32xf32>
    %58 = vector.broadcast %56 : vector<1x32xf32> to vector<4x32xf32>
    %59 = arith.mulf %58, %57 : vector<4x32xf32>
    %60 = vector.broadcast %10 : vector<4x1xf32> to vector<4x32xf32>
    %61 = arith.addf %59, %60 : vector<4x32xf32>
    %62 = vector.broadcast %55 : vector<1x32xf32> to vector<4x32xf32>
    %63 = arith.mulf %61, %62 : vector<4x32xf32>
    %cst_26 = arith.constant dense<0.000000e+00> : vector<4xf32>
    %64 = vector.multi_reduction <add>, %63, %cst_26 [1] : vector<4x32xf32> to vector<4xf32>
    %cst_27 = arith.constant 3.125000e-02 : f32
    %65 = vector.broadcast %cst_27 : f32 to vector<4xf32>
    %66 = arith.mulf %64, %65 : vector<4xf32>
    %67 = vector.shape_cast %66 : vector<4xf32> to vector<1x4xf32>
    %c0_28 = arith.constant 0 : index
    %c0_29 = arith.constant 0 : index
    %c0_30 = arith.constant 0 : index
    %68 = vector.load %arg7[%c0_28, %c0_29, %c0_30] : memref<1x4x32xf32, #tpu.memory_space<vmem>>, vector<1x4x32xf32>
    %69 = vector.shape_cast %68 : vector<1x4x32xf32> to vector<4x32xf32>
    %70 = vector.shape_cast %61 : vector<4x32xf32> to vector<1x4x32xf32>
    tpu.vector_store %arg7[%c0_28, %c0_29, %c0_30], %70 {strides = array<i32>} : memref<1x4x32xf32, #tpu.memory_space<vmem>>, vector<1x4x32xf32>,
    %71 = tpu.concatenate %55, %20 in 0 : vector<1x32xf32>, vector<1x32xf32> -> vector<2x32xf32>
    %c0_31 = arith.constant 0 : index
    %c0_32 = arith.constant 0 : index
    %c0_33 = arith.constant 0 : index
    %72 = vector.load %arg8[%c0_31, %c0_32, %c0_33] : memref<1x2x32xf32, #tpu.memory_space<vmem>>, vector<1x2x32xf32>
    %73 = vector.shape_cast %72 : vector<1x2x32xf32> to vector<2x32xf32>
    %74 = vector.shape_cast %71 : vector<2x32xf32> to vector<1x2x32xf32>
    tpu.vector_store %arg8[%c0_31, %c0_32, %c0_33], %74 {strides = array<i32>} : memref<1x2x32xf32, #tpu.memory_space<vmem>>, vector<1x2x32xf32>,
    %75 = tpu.concatenate %16, %31 in 0 : vector<1x16xf32>, vector<1x16xf32> -> vector<2x16xf32>
    %c0_34 = arith.constant 0 : index
    %c0_35 = arith.constant 0 : index
    %c0_36 = arith.constant 0 : index
    %76 = vector.load %arg9[%c0_34, %c0_35, %c0_36] : memref<1x2x16xf32, #tpu.memory_space<vmem>>, vector<1x2x16xf32>
    %77 = vector.shape_cast %76 : vector<1x2x16xf32> to vector<2x16xf32>
    %78 = vector.shape_cast %75 : vector<2x16xf32> to vector<1x2x16xf32>
    tpu.vector_store %arg9[%c0_34, %c0_35, %c0_36], %78 {strides = array<i32>} : memref<1x2x16xf32, #tpu.memory_space<vmem>>, vector<1x2x16xf32>,
    %c0_37 = arith.constant 0 : index
    %c0_38 = arith.constant 0 : index
    %c0_39 = arith.constant 0 : index
    %79 = vector.load %arg10[%c0_37, %c0_38, %c0_39] : memref<1x1x4xf32, #tpu.memory_space<vmem>>, vector<1x1x4xf32>
    %80 = vector.shape_cast %79 : vector<1x1x4xf32> to vector<1x4xf32>
    %81 = vector.shape_cast %67 : vector<1x4xf32> to vector<1x1x4xf32>
    tpu.vector_store %arg10[%c0_37, %c0_38, %c0_39], %81 {strides = array<i32>} : memref<1x1x4xf32, #tpu.memory_space<vmem>>, vector<1x1x4xf32>,
    return
  }
  func.func @transform_0(%arg0: i32) -> (i32, i32, i32) {
    %c0_i32 = arith.constant 0 : i32
    %c0_i32_0 = arith.constant 0 : i32
    %c0_i32_1 = arith.constant 0 : i32
    return %arg0, %c0_i32, %c0_i32_0 : i32, i32, i32
  }
  func.func @transform_1(%arg0: i32) -> (i32, i32) {
    %c0_i32 = arith.constant 0 : i32
    %c0_i32_0 = arith.constant 0 : i32
    %c0_i32_1 = arith.constant 0 : i32
    return %c0_i32, %c0_i32_0 : i32, i32
  }
  func.func @transform_2(%arg0: i32) -> (i32, i32) {
    %c0_i32 = arith.constant 0 : i32
    %c0_i32_0 = arith.constant 0 : i32
    %c0_i32_1 = arith.constant 0 : i32
    return %c0_i32, %c0_i32_0 : i32, i32
  }
  func.func @transform_3(%arg0: i32) -> (i32, i32) {
    %c0_i32 = arith.constant 0 : i32
    %c0_i32_0 = arith.constant 0 : i32
    %c0_i32_1 = arith.constant 0 : i32
    return %c0_i32, %c0_i32_0 : i32, i32
  }
  func.func @transform_4(%arg0: i32) -> (i32, i32) {
    %c0_i32 = arith.constant 0 : i32
    %c0_i32_0 = arith.constant 0 : i32
    %c0_i32_1 = arith.constant 0 : i32
    return %c0_i32, %c0_i32_0 : i32, i32
  }
  func.func @transform_5(%arg0: i32) -> (i32, i32) {
    %c0_i32 = arith.constant 0 : i32
    %c0_i32_0 = arith.constant 0 : i32
    %c0_i32_1 = arith.constant 0 : i32
    return %c0_i32, %c0_i32_0 : i32, i32
  }
  func.func @transform_6(%arg0: i32) -> (i32, i32, i32) {
    %c0_i32 = arith.constant 0 : i32
    %c0_i32_0 = arith.constant 0 : i32
    %c0_i32_1 = arith.constant 0 : i32
    return %arg0, %c0_i32, %c0_i32_0 : i32, i32, i32
  }
  func.func @transform_7(%arg0: i32) -> (i32, i32, i32) {
    %c0_i32 = arith.constant 0 : i32
    %c0_i32_0 = arith.constant 0 : i32
    %c0_i32_1 = arith.constant 0 : i32
    return %arg0, %c0_i32, %c0_i32_0 : i32, i32, i32
  }
  func.func @transform_8(%arg0: i32) -> (i32, i32, i32) {
    %c0_i32 = arith.constant 0 : i32
    %c0_i32_0 = arith.constant 0 : i32
    %c0_i32_1 = arith.constant 0 : i32
    return %arg0, %c0_i32, %c0_i32_0 : i32, i32, i32
  }
  func.func @transform_9(%arg0: i32) -> (i32, i32, i32) {
    %c0_i32 = arith.constant 0 : i32
    %c0_i32_0 = arith.constant 0 : i32
    %c0_i32_1 = arith.constant 0 : i32
    return %arg0, %c0_i32, %c0_i32_0 : i32, i32, i32
  }
}

</mosaic_0001>

<bundles_post_ra>
// kernel: stsr_pooling.1
= control target key start
LH: loop header
LB: loop body
LE: loop exit
PB: predicated region body
PF: predicated region fallthrough
CT: control target
= control target key end

     0   :  { %15 = vsyncpa [#allocation3], 0  ;;  %s1513_s0 = inlined_call_operand.vmem [shape: f32[2,16,32], index: 0, kind: input, shape index: {}]   ;;  %s1514_s1 = inlined_call_operand.vmem [shape: f32[12,16], index: 1, kind: input, shape index: {}]   ;;  %s1515_s2 = inlined_call_operand.vmem [shape: f32[12,1], index: 2, kind: input, shape index: {}]   ;;  %s1516_s3 = inlined_call_operand.vmem [shape: f32[16,4], index: 3, kind: input, shape index: {}]   ;;  %s1517_s4 = inlined_call_operand.vmem [shape: f32[4,16], index: 4, kind: input, shape index: {}]   ;;  %s1518_s5 = inlined_call_operand.vmem [shape: f32[1,29], index: 5, kind: input, shape index: {}]   ;;  %s1519_s6 = inlined_call_operand.hbm [shape: f32[2,4,32], index: 6, kind: output, shape index: {0}]   ;;  %s1520_s7 = inlined_call_operand.vmem [shape: f32[2,2,32], index: 7, kind: output, shape index: {1}]   ;;  %s1521_s8 = inlined_call_operand.vmem [shape: f32[2,2,16], index: 8, kind: output, shape index: {2}]   ;;  %s1522_s9 = inlined_call_operand.hbm [shape: f32[2,1,4], index: 9, kind: output, shape index: {3}]  }
   0x1   :  { %17 = vsyncpa [#allocation3 + $0x1], 0 }
   0x2   :  { %18 = vsyncpa [#allocation5], 0 }
   0x3   :  { %20 = vsyncpa [#allocation5 + $0x1], 0  ;;  %s1311_s30 = smov 0   ;;  %s1313_s10 = smov 0  }
   0x4   :  { %s1315_s11 = smov 0   ;;  %s1317_s12 = smov 0  }
   0x5 LB: > { %s1332_s13 = sadd.s32 4294967295, %s1250_s12   ;;  %s1026_s14 = sadd.s32 4294967294, %s1250_s12   ;;  %s1250_s12 = sphi %s1317_s12, %s1528_s12   ;;  %s1246_s11 = sphi %s1315_s11, %s1527_s11   ;;  %s1242_s10 = sphi %s1313_s10, %s1526_s10   ;;  %s1238_s30 = sphi %s1311_s30, %s1525_s30  }
   0x6   : > { %s1336_s15 = sadd.s32 1, %s1250_s12   ;;  %s164_s16 = sadd.s32 1, %s1246_s11 }
   0x7   : > { %s161_s17 = ssub.s32 %s1250_s12, %s1336_s15  ;;  %p174_p0 = scmp.ne.s32.totalorder %s1246_s11, %s1242_s10 }
   0x8   : > { %p162_p1 = scmp.eq.s32.totalorder %s161_s17, 0  ;;  %p175_p2 = scmp.eq.s32.totalorder %s1332_s13, 1 }
   0x9   : > { %p180_p3 = scmp.ne.s32.totalorder %s1242_s10, %s1238_s30  ;;  %p181_p4 = scmp.eq.s32.totalorder %s1026_s14, 1 }
   0xa   : > { %s1347_s18 = scalar_select %p162_p1, %s1246_s11, %s164_s16  }
   0xb   : > { %p1349_p5 = por %p175_p2, %p174_p0  ;;  %p1353_p6 = por %p181_p4, %p180_p3 }
   0xc   : > { %p1029_p7 = scmp.ge.s32.totalorder %s1250_s12, 1  ;;  %p300_p8 = scmp.lt.s32.totalorder %s1250_s12, 3 }
   0xe   : > { %p301_p9 = pnand %p1029_p7, %p300_p8 }
   0xf   : > { %p348_p10 = scmp.lt.s32.totalorder (!%p301_p9), %s1332_s13, 1  ;;  %v392_v0 = vlaneseq (!%p301_p9)  ;;  %vm371_vm0 = vcmask (!%p301_p9), 261120   ;;  %v365_v11 = vld [vmem:[%s1516_s3] sm:$0xff] (!%p301_p9)  ;;  %v366_v12 = vld [vmem:[%s1516_s3 + $0x8] sm:$0xff] (!%p301_p9)  ;;  %v1252_v15 = vmov (!%p301_p9), 0.0|0.0   ;;  %vm1253_vm1 = vmmov (!%p301_p9), 0  }
  0x10   : > { %304 = sbr.rel (%p301_p9) target bundleno = 1530 (0x5fa), region = 44  ;;  %v1085_v14 = vpack.c.bf16 (!%p301_p9), %v366_v12, %v365_v11  ;;  %1084 = vmatprep.subr.bf16.mxu0 (!%p301_p9), %v1252_v15  ;;  %v1254_v16 = vmov (!%p301_p9), 0.0   ;;  %v1384_v17 = vld [vmem:[%s1518_s5] sm:$0x1] (!%p301_p9)  ;;  %s1255_s17 = smov (!%p301_p9), 119   ;;  %vm403_vm2 = vcmask (!%p301_p9), 130112  }
  0x11   : > { %v393_v1 = vand.u32 (!%p301_p9), 127, %v392_v0  ;;  %v395_v2 = vshrl.u32 (!%p301_p9), %v392_v0, 7  ;;  %1064 = vmatprep.mubr.msk.f32.mxu0 (!%p301_p9), %vm1253_vm1, %v1254_v16  ;;  %1067 = vmatprep.subr.mxu1 (!%p301_p9), %v1254_v16  ;;  %vm413_vm3 = vcmask (!%p301_p9), 130048   ;;  %v367_v27 = vld [vmem:[%s1517_s4] sm:$0xf] (!%p301_p9)  ;;  %vm494_vm4 = vcmask (!%p301_p9), 1043456  }
  0x12   : > { %1086 = vmatpush3.bf16.msra.mxu0 (!%p301_p9), %v1085_v14  ;;  %1069 = vmatprep.mubr.msk.f32.mxu1 (!%p301_p9), %vm1253_vm1, %v1254_v16  ;;  %s1256_s24 = smov (!%p301_p9), 115   ;;  %vm490_vm5 = vcmask (!%p301_p9), 31744   ;;  %v1257_v40 = vmov (!%p301_p9), 0   ;;  %vm828_vm6 = vcmask (!%p301_p9), 1040384   ;;  %vm836_vm7 = vcmask (!%p301_p9), 123904   ;;  %v363_v49 = vld [vmem:[%s1515_s2] sm:$0xff] (!%p301_p9) }
  0x13   : > { %v1364_v3 = vsub.s32 (!%p301_p9), %v393_v1, %v395_v2  ;;  %v398_v10 = vadd.s32 (!%p301_p9), 4294967288, %v393_v1  ;;  %1079 = vmatprep.subr.mxu0 (!%p301_p9), %v1254_v16  ;;  %v1386_v18 = vsub.s32 (!%p301_p9), 0, %v395_v2  ;;  %1068 = vmatpush3.msk.msra.mxu1 (!%p301_p9), %vm494_vm4, %v367_v27  ;;  %v361_v50 = vld [vmem:[%s1514_s1] sm:$0xff] (!%p301_p9)  ;;  %v362_v54 = vld [vmem:[%s1514_s1 + $0x8] sm:$0xf] (!%p301_p9)  ;;  %v1258_v58 = vmov (!%p301_p9), 8  }
  0x14   : > { %1142 = vset.pattern.permute.xlu1 (!%p301_p9), %v1257_v40  ;;  %1145 = vset.pattern.permute.xlu0 (!%p301_p9), %v1257_v40  ;;  %v364_v59 = vld [vmem:[%s1515_s2 + $0x8] sm:$0xf] (!%p301_p9)  ;;  %vm726_vm8 = vcmask (!%p301_p9), 64512   ;;  %vm830_vm9 = vcmask (!%p301_p9), 254976   ;;  %s1434_s14 = sand.u32 (!%p301_p9), 1, %s1242_s10   ;;  %vm822_vm10 = vcmask (!%p301_p9), 257024  }
  0x15   : > { %v1377_v13 = vsub.s32 (!%p301_p9), %v398_v10, %v395_v2  ;;  %v409_v19 = vrot.slane (!%p301_p9), %v1384_v17, %v1386_v18  ;;  %s1030_s16 = sshll.u32 (!%p301_p9), %s1434_s14, 2  ;;  %s847_s26 = scalar_lea.sflag (!%p301_p9), [#allocation3], %s1434_s14 }
  0x17   : > { %s1361_s21 = scalar_select %p348_p10, %s1332_s13, 1  ;;  %410 = vrot.lane.b32.xlu1 %v409_v19, %s1255_s17 }
  0x19   : > { %s1048_s22 = sshll.u32 %s1361_s21, 4 }
  0x1a   : > { %s352_s25 = scalar_lea.vmem %s1513_s0, %s1048_s22 }
  0x1b   : > { %v369_v4 = vld [vmem:[%s352_s25] sm:$0xff]  ;;  %v370_v5 = vld [vmem:[%s352_s25 + $0x8] sm:$0xff]  ;;  %487 = vrot.lane.b32.xlu1 %v409_v19, %s1256_s24  ;;  %s1033_s25 = sshll.u32 %s1361_s21, 1  ;;  %s329_s21 = scalar_lea.vmem [#allocation2], %s1030_s16 }
  0x1c   : > { %v372_v6 = vsel %vm371_vm0, %v369_v4, 0.0  ;;  %v375_v7 = vsel %vm371_vm0, %v370_v5, 0.0  ;;  %v1087_v8 = vpack.c.bf16 %v370_v5, %v369_v4  ;;  %s360_s28 = scalar_lea.vmem %s1521_s8, %s1033_s25  ;;  %s356_s29 = scalar_lea.vmem %s1520_s7, %s1033_s25 }
  0x1d   : > { %373 = vadd.xlane.f32.xlu0 %v372_v6  ;;  %v1369_v9 = vadd.f32 %v375_v7, %v372_v6  ;;  %s1044_s25 = sshll.u32 %s1332_s13, 6  ;;  %s872_s24 = sshll.u32 %s329_s21, 4  ;;  %s873_s24 = int_to_ptr.vmem [resolvable:$true] %s872_s24 }
  0x1e   : > { %1088 = vmatprep.subr.bf16.mxu1 %v1087_v8  ;;  %s1444_s23 = scalar_lea.hbm %s1519_s6, %s1044_s25  ;;  %s1156_s27 = scalar_lea.vmem %s873_s24, 64 }
  0x1f   : > { %v382_v5 = vrot.slane %v1369_v9, 4  ;;  %p1157_p11 = scmp.ne.s32.totalorder %s873_s24, %s1156_s27 }
  0x21   : > { %376 = vadd.xlane.f32.xlu0 %v375_v7  ;;  %v383_v10 = vadd.f32 %v382_v5, %v1369_v9  ;;  %p1158_p12 = pnand %p1157_p11, %p1349_p5 }
  0x23   : > { %v384_v11 = vrot.slane %v383_v10, 2  ;;  %p1159_p13 = pneg %p1158_p12 }
  0x25   : > { %v385_v12 = vadd.f32 %v384_v11, %v383_v10 }
  0x27   : > { %v386_v15 = vrot.slane %v385_v12, 1 }
  0x89   : > { %v411_v28 = vpop.permute.xlu1 %410 }
  0x8d   : > { %v488_v33 = vpop.permute.xlu1 %487 }
  0xaa   : > { %v374_v20 = vpop.xlane.xlu0 %373 }
  0xab   : > { %v379_v21 = vmul.f32 0.03125, %v374_v20 }
  0xad   : > { %v397_v24 = vrot.slane %v379_v21, %v1364_v3 }
  0xae   : > { %v377_v22 = vpop.xlane.xlu0 %376 }
  0xaf   : > { %v380_v23 = vmul.f32 0.03125, %v377_v22 }
  0xb1   : > { %v402_v25 = vrot.slane %v380_v23, %v1377_v13 }
  0xb3   : > { %v404_v26 = vsel %vm403_vm2, %v402_v25, %v397_v24 }
  0xb4   : > { %1065 = vmatmul.mubr.msk.f32.vlgmr.msra.gmra.mrb[0].mxu0 %vm413_vm3, %v404_v26 }
  0xb5   : > { %1081 = vmatprep.mubr.msk.f32.mxu0 %vm1253_vm1, %v1254_v16  ;;  %v387_v16 = vadd.f32 %v386_v15, %v385_v12 }
 0x187   : > { %v482_v29 = vpop.f32.mrb[0].mxu0 }
 0x188   : > { %v483_v30 = vadd.f32 %v482_v29, %v411_v28  ;;  %v1066_v31 = vpop.f32.mrb[1].mxu0 }
 0x18a   : > { %v486_v32 = vmax.f32 %v483_v30, 0.0 }
 0x18c   : > { %1070 = vmatmul.mubr.msk.f32.vlgmr.msra.gmra.mrb[0].mxu1 %vm490_vm5, %v486_v32 }
 0x18d   : > { %1090 = vmatpush3.bf16.msra.mxu1 %v1087_v8  ;;  %1076 = vmatprep.mubr.msk.f32.mxu1 %vm413_vm3, %v361_v50 }
 0x25f   : > { %v564_v34 = vpop.f32.mrb[0].mxu1 }
 0x260   : > { %v565_v35 = vadd.f32 %v564_v34, %v488_v33  ;;  %v1071_v36 = vpop.f32.mrb[1].mxu1 }
 0x262   : > { %v1038_v37 = vmul.f32 -1.442695, %v565_v35 }
 0x264   : > { %1146 = vpow2.f32 %v1038_v37 }
 0x26e   : > { %v1147_v38 = vpop.eup %1146 }
 0x26f   : > { %v571_v39 = vadd.f32 1.0, %v1147_v38 }
 0x271   : > { %1148 = vrcp.f32 %v571_v39 }
 0x27b   : > { %v1149_v41 = vpop.eup %1148 }
 0x27c   : > { %v833_v42 = vrot.slane %v1149_v41, 7  ;;  %v578_v43 = vrot.slane %v1149_v41, %v1386_v18 }
 0x27e   : > { %v835_v44 = vsel %vm828_vm6, %v404_v26, %v833_v42  ;;  %584 = vbcast.lane.b32.xlu1 %v578_v43, 264  ;;  %580 = vbcast.lane.b32.xlu0 %v578_v43, 256 }
 0x27f   : > { %837 = vst.msk [vmem:[%s360_s28] sm:$0x3] %vm836_vm7, %v835_v44  ;;  %s1259_s28 = smov [#allocation2]  }
 0x2f0   : > { %v581_v45 = vpop.permute.xlu0 %580  ;;  %v585_v47 = vpop.permute.xlu1 %584 }
 0x2f1   : > { %v588_v46 = vmul.f32 %v581_v45, %v379_v21  ;;  %v589_v48 = vmul.f32 %v585_v47, %v380_v23 }
 0x2f3   : > { %598 = vperm.xlu1 %1142, %v588_v46  }
 0x2f7   : > { %601 = vperm.xlu1 %1142, %v589_v48  }
 0x2fb   : > { %713 = vperm.xlu1 %1142, %v363_v49  }
 0x2ff   : > { %1143 = vset.pattern.permute.xlu1 %v1258_v58 }
 0x300   : > { %719 = vperm.xlu1 %1143, %v1384_v17  }
 0x304   : > { %1144 = vset.pattern.permute.xlu1 %v1257_v40 }
 0x305   : > { %813 = vperm.xlu1 %1144, %v364_v59  }
 0x372   : > { %v599_v51 = vpop.permute.xlu1 %598 }
 0x373   : > { %v606_v53 = vrot.slane %v599_v51, %v1364_v3 }
 0x376   : > { %v602_v52 = vpop.permute.xlu1 %601 }
 0x377   : > { %v610_v55 = vrot.slane %v602_v52, %v1377_v13 }
 0x379   : > { %v611_v56 = vsel %vm403_vm2, %v610_v55, %v606_v53 }
 0x37a   : > { %v629_v57 = vmul.f32 %v611_v56, %v362_v54  ;;  %v714_v61 = vpop.permute.xlu1 %713 }
 0x37c   : > { %1077 = vmatmul.mubr.msk.f32.vlgmr.msra.gmra.mrb[2].mxu1 %vm413_vm3, %v629_v57 }
 0x37f   : > { %v720_v1 = vpop.permute.xlu1 %719 }
 0x380   : > { %v725_v2 = vrot.slane %v720_v1, %v1386_v18 }
 0x384   : > { %v814_v22 = vpop.permute.xlu1 %813 }
 0x44f   : > { %v1078_v60 = vpop.f32.mrb[2].mxu1 }
 0x450   : > { %v702_v62 = vpop.f32.mrb[3].mxu1 }
 0x451   : > { %v716_v63 = vadd.f32 %v714_v61, %v702_v62 }
 0x453   : > { %1150 = vtanh.f32 %v716_v63 }
 0x45d   : > { %v1151_v0 = vpop.eup %1150 }
 0x45e   : > { %1080 = vmatpush3.msra.mxu0 %v1151_v0 }
 0x45f   : > { %1082 = vmatmul.mubr.msk.f32.vlgmr.msra.gmra.mrb[2].mxu0 %vm726_vm8, %v1384_v17  ;;  %v389_v17 = vmul.f32 0.0625, %v387_v16 }
 0x532   : > { %v795_v4 = vpop.f32.mrb[2].mxu0 }
 0x533   : > { %v796_v6 = vadd.f32 %v795_v4, %v725_v2  ;;  %v1083_v7 = vpop.f32.mrb[3].mxu0 }
 0x535   : > { %v1042_v8 = vmul.f32 -1.442695, %v796_v6 }
 0x537   : > { %1152 = vpow2.f32 %v1042_v8 }
 0x541   : > { %v1153_v13 = vpop.eup %1152 }
 0x542   : > { %v802_v14 = vadd.f32 1.0, %v1153_v13 }
 0x544   : > { %1154 = vrcp.f32 %v802_v14 }
 0x54e   : > { %v1155_v19 = vpop.eup %1154 }
 0x54f   : > { %v829_v9 = vsel %vm828_vm6, %v1155_v19, %v389_v17  ;;  %v805_v20 = vmul.f32 %v1155_v19, %v389_v17  ;;  %v820_v25 = vrot.slane %v1155_v19, %v1386_v18 }
 0x550   : > { %831 = vst.msk [vmem:[%s356_s29] sm:$0x3] %vm830_vm9, %v829_v9  ;;  %s1160_s29 = sshll.u32 %s1259_s28, 4  ;;  %s1161_s29 = int_to_ptr.vmem [resolvable:$false] %s1160_s29 }
 0x551   : > { %v809_v21 = vrot.slane %v805_v20, %v1386_v18  ;;  %s1162_s16 = scalar_lea.vmem %s1161_s29, 128  ;;  %p1163_p0 = scmp.lt.s32.totalorder %s873_s24, %s1161_s29 }
 0x552   : > { %p1164_p1 = scmp.lt.s32.totalorder %s1162_s16, %s1156_s27 }
 0x553   : > { %v810_v23 = vmul.f32 %v1078_v60, %v809_v21 }
 0x554   : > { %p1165_p2 = por %p1164_p1, %p1163_p0 }
 0x555   : > { %v816_v24 = vadd.f32 %v814_v22, %v810_v23 }
 0x556   : > { %p1166_p3 = pnand %p1165_p2, %p1159_p13 }
 0x557   : > { %v821_v26 = vmul.f32 %v820_v25, %v816_v24  ;;  %827 = vst.msk [vmem:[%s329_s21] sm:$0xf] %vm822_vm10, %v816_v24 }
 0x559   : > { %v823_v27 = vsel %vm822_vm10, %v821_v26, 0.0 }
 0x55a   : > { %824 = vadd.xlane.f32.xlu0 %v823_v27 }
 0x55b   : > { %1169 = shalt.err (!%p1166_p3)
}
 0x55c   : > { %s1170_s21 = scalar_lea.hbm %s1444_s23, 64  ;;  %s1174_s22 = scalar_lea.hbm %s1519_s6, 128 }
 0x55d   : > { %p1171_p4 = scmp.ne.s32.totalorder %s1444_s23, %s1170_s21  ;;  %p1175_p9 = scmp.lt.u32.totalorder %s1444_s23, %s1519_s6 }
 0x55e   : > { %p1176_p10 = scmp.lt.u32.totalorder %s1174_s22, %s1170_s21  ;;  %p1178_p12 = scmp.lt.u32.totalorder %s1170_s21, %s1444_s23 }
 0x55f   : > { %p1172_p7 = pnand %p1171_p4, %p1349_p5 }
 0x560   : > { %p1177_p11 = por %p1176_p10, %p1175_p9 }
 0x561   : > { %p1173_p8 = pneg %p1172_p7 }
 0x562   : > { %p1179_p13 = por %p1178_p12, %p1177_p11 }
 0x564   : > { %p1180_p0 = pnand %p1179_p13, %p1173_p8 }
 0x566   : > { %1183 = shalt.err (!%p1180_p0)
}
 0x567   : > { %1091 = dma.vmem_to_hbm [thread:$0]  (%p1349_p5), %s873_s24, 64, %s1444_s23, %s847_s26   ;;  %vm844_vm11 = vcmask 24576  }
 0x568   : > { %s1045_s27 = sshll.u32 %s1332_s13, 4  ;;  %s347_s16 = scalar_lea.vmem [#allocation4], %s1434_s14 }
 0x569   : > { %s891_s25 = sshll.u32 %s347_s16, 4  ;;  %s1470_s22 = scalar_lea.hbm %s1522_s9, %s1045_s27  ;;  %s1472_s25 = int_to_ptr.vmem [resolvable:$true] %s891_s25 }
 0x56a   : > { %s860_s23 = scalar_lea.sflag [#allocation5], %s1434_s14  ;;  %s1184_s24 = scalar_lea.vmem %s1472_s25, 16 }
 0x56b   : > { %p1185_p1 = scmp.ne.s32.totalorder %s1472_s25, %s1184_s24  ;;  %s1260_s13 = smov [#allocation4]  }
 0x56c   : > { %s1188_s26 = sshll.u32 %s1260_s13, 4  ;;  %s1189_s26 = int_to_ptr.vmem [resolvable:$false] %s1188_s26 }
 0x56d   : > { %p1186_p2 = pnand %p1185_p1, %p1349_p5  ;;  %s1190_s28 = scalar_lea.vmem %s1189_s26, 32 }
 0x56e   : > { %p1191_p4 = scmp.lt.s32.totalorder %s1472_s25, %s1189_s26  ;;  %p1192_p7 = scmp.lt.s32.totalorder %s1190_s28, %s1184_s24 }
 0x56f   : > { %p1187_p3 = pneg %p1186_p2 }
 0x570   : > { %p1193_p8 = por %p1192_p7, %p1191_p4 }
 0x572   : > { %p1194_p9 = pnand %p1193_p8, %p1187_p3 }
 0x5e7   : > { %v825_v18 = vpop.xlane.xlu0 %824 }
 0x5e8   : > { %v826_v28 = vmul.f32 0.03125, %v825_v18 }
 0x5ea   : > { %v842_v29 = vrot.slane %v826_v28, %v1364_v3 }
 0x5ec   : > { %845 = vst.msk [vmem:[%s347_s16] sm:$0x1] %vm844_vm11, %v842_v29 }
 0x5ed   : > { %1197 = shalt.err (!%p1194_p9)
}
 0x5ee   : > { %s1198_s14 = scalar_lea.hbm %s1470_s22, 16  ;;  %s1202_s16 = scalar_lea.hbm %s1522_s9, 32 }
 0x5ef   : > { %p1199_p10 = scmp.ne.s32.totalorder %s1470_s22, %s1198_s14  ;;  %p1203_p13 = scmp.lt.u32.totalorder %s1470_s22, %s1522_s9 }
 0x5f0   : > { %p1204_p0 = scmp.lt.u32.totalorder %s1202_s16, %s1198_s14  ;;  %p1206_p2 = scmp.lt.u32.totalorder %s1198_s14, %s1470_s22 }
 0x5f1   : > { %p1200_p11 = pnand %p1199_p10, %p1349_p5 }
 0x5f2   : > { %p1205_p1 = por %p1204_p0, %p1203_p13 }
 0x5f3   : > { %p1201_p12 = pneg %p1200_p11 }
 0x5f4   : > { %p1207_p3 = por %p1206_p2, %p1205_p1 }
 0x5f6   : > { %p1208_p4 = pnand %p1207_p3, %p1201_p12 }
 0x5f8   : > { %1211 = shalt.err (!%p1208_p4)
}
 0x5f9   : > { %1092 = dma.vmem_to_hbm [thread:$0]  (%p1349_p5), %s1472_s25, 16, %s1470_s22, %s860_s23  }
 0x5fa PF: > { %p1102_p7 = scmp.ge.s32.totalorder %s1250_s12, 2  ;;  %s903_s24 = sand.u32 1, %s1238_s30  }
 0x5fb   : > { %s904_s13 = scalar_lea.sflag [#allocation3], %s903_s24 }
 0x5fc   : > { %p1096_p8 = pnand %p1102_p7, %p1353_p6 }
 0x5fe   : > { %1229 = dma.done.wait (!%p1096_p8), %s904_s13, 64  }
 0x5ff   : > { %1231 = vsyncadd (!%p1096_p8), %s904_s13, 4294967232  ;;  %s927_s26 = scalar_lea.sflag [#allocation5], %s903_s24 }
 0x600   : > { %1233 = dma.done.wait (!%p1096_p8), %s927_s26, 16  }
 0x601   : > { %1235 = vsyncadd (!%p1096_p8), %s927_s26, 4294967280  ;;  %p23_p5 = scmp.ge.s32.totalorder %s1336_s15, 4   ;;  %s1525_s30 = smov %s1242_s10 }
 0x602   : > { %s1526_s10 = smov %s1246_s11  ;;  %s1527_s11 = smov %s1347_s18 }
 0x603   : > { %s1528_s12 = smov %s1336_s15  ;;  %25 = sbr.rel (!%p23_p5) target bundleno = 5 (0x5), region = 120 }
 0x60a   :  { %931 = vsyncpa [#allocation3], 1 }
 0x60b   :  { %933 = vsyncpa [#allocation3 + $0x1], 1 }
 0x60c   :  { %934 = vsyncpa [#allocation5], 1 }
 0x60d   :  { %936 = vsyncpa [#allocation5 + $0x1], 1 }

</bundles_post_ra>
